<compile_context>
chip_gen: v7x
topology: tpu7x:2x2x1
jax: 0.10.0
libtpu: 0.0.40
codegen_flags: <defaults>
</compile_context>

<pallas_src>
import functools

import jax
import jax.numpy as jnp
from jax import lax
from jax.experimental import pallas as pl
from jax.experimental.pallas import tpu as pltpu


def _resblock_kernel(x_ref, mask_ref, w1_ref, b1_ref, w2_ref, b2_ref, out_ref,
                     pad_ref, slab_ref, *, H, W, res_scale):
    """Fused ResBlock for one batch element in lane-dense (C, H*W) layout.

    x_ref   : (C, HW)           f32 input tile (also the residual branch)
    mask_ref: (2, HW)           f32 column masks (row 0: left, row 1: right)
    w1_ref  : (C, 9*C)          f32 folded conv1 weights  [cout, tap*Cin + cin]
    b1_ref  : (C, 1)            f32
    w2_ref  : (C, 9*C)          f32 folded conv2 weights
    b2_ref  : (C, 1)            f32
    out_ref : (C, HW)           f32 output tile
    pad_ref : (C, 128+HW+128)   f32 scratch: [zero tile | image | zero tile]
    slab_ref: (9*C, HW)         f32 im2col scratch
    """
    C, HW = out_ref.shape
    assert HW == H * W
    BASE = 128                                   # image region starts on a lane tile

    m_left = mask_ref[0:1, :]                    # 0 where col == 0   (left border)
    m_right = mask_ref[1:2, :]                   # 0 where col == W-1 (right border)

    # Zero the two halo lane-tiles once per grid step; they provide the top/bottom
    # zero rows for every (dy, dx) shifted read (cheap, aligned, per-core-safe).
    zero_tile = jnp.zeros((C, BASE), jnp.float32)
    pad_ref[:, 0:BASE] = zero_tile
    pad_ref[:, BASE + HW:BASE + HW + BASE] = zero_tile

    x = x_ref[...]                               # (C, HW) f32

    def conv3x3(src, w_ref_, b_ref_):
        # Stage the source into the lane-aligned image region of the pad buffer.
        pad_ref[:, BASE:BASE + HW] = src
        # Build the im2col slab: tap t = dy*3+dx occupies rows [t*C, (t+1)*C).
        for dy in range(3):
            for dx in range(3):
                t = dy * 3 + dx
                s = BASE + (dy - 1) * W + (dx - 1)           # static lane offset
                piece = pad_ref[:, s:s + HW]                 # (C, HW) shifted load
                if dx == 0:
                    piece = piece * m_left                   # kill wrapped left col
                elif dx == 2:
                    piece = piece * m_right                  # kill wrapped right col
                slab_ref[t * C:(t + 1) * C, :] = piece
        # Single folded MXU dot per conv: (C, 9C) x (9C, HW) -> (C, HW), f32 accum.
        return jnp.dot(w_ref_[...], slab_ref[...],
                       preferred_element_type=jnp.float32) + b_ref_[...]

    h1 = jnp.maximum(conv3x3(x, w1_ref, b1_ref), 0.0)        # conv1 + ReLU
    out = conv3x3(h1, w2_ref, b2_ref) * res_scale + x        # conv2, scale, residual
    out_ref[...] = out.astype(out_ref.dtype)                 # single lane-dense store


def _fold_weights(w):
    """(3, 3, Cin, Cout) HWIO -> (Cout, 9*Cin) with row index r = (dy*3+dx)*Cin + cin."""
    kh, kw, cin, cout = w.shape
    return jnp.transpose(w.reshape(kh * kw, cin, cout), (2, 0, 1)).reshape(cout, kh * kw * cin)


def resblock_pallas(x_nchw, w1, b1, w2, b2, *, res_scale=1.0):
    """ResBlock forward. x_nchw: (N, C, H, W) f32; w*: (3,3,Cin,Cout) HWIO; b*: (Cout,)."""
    N, C, H, W = x_nchw.shape
    Cout = w1.shape[-1]
    assert w1.shape == (3, 3, C, Cout) and w2.shape == (3, 3, Cout, Cout)
    assert C == Cout, "residual add requires in_channels == out_channels (stride=1)"
    HW = H * W
    assert HW % 128 == 0, "lane-dense layout expects H*W to be a multiple of 128"

    x_flat = x_nchw.reshape(N, C, HW).astype(jnp.float32)     # free reshape, no transpose
    w1f = _fold_weights(w1).astype(jnp.float32)
    w2f = _fold_weights(w2).astype(jnp.float32)
    b1r = b1.reshape(Cout, 1).astype(jnp.float32)
    b2r = b2.reshape(Cout, 1).astype(jnp.float32)

    # Precomputed column masks for the flattened-row layout (left/right SAME padding).
    col = jnp.arange(HW, dtype=jnp.int32) % W
    masks = jnp.stack([(col != 0), (col != W - 1)]).astype(jnp.float32)   # (2, HW)

    kernel = functools.partial(_resblock_kernel, H=H, W=W, res_scale=float(res_scale))

    flops = N * 2 * (2 * HW * (9 * C) * Cout)                  # two folded convs / image
    bytes_accessed = 4 * (2 * N * C * HW + 2 * Cout * 9 * C + 2 * Cout + 2 * HW)

    out_flat = pl.pallas_call(
        kernel,
        out_shape=jax.ShapeDtypeStruct((N, Cout, HW), jnp.float32),
        grid_spec=pltpu.PrefetchScalarGridSpec(
            num_scalar_prefetch=0,
            grid=(N,),
            in_specs=[
                pl.BlockSpec((None, C, HW), lambda n: (n, 0, 0)),     # x (lane-dense)
                pl.BlockSpec((2, HW), lambda n: (0, 0)),              # column masks
                pl.BlockSpec((Cout, 9 * C), lambda n: (0, 0)),        # w1 folded
                pl.BlockSpec((Cout, 1), lambda n: (0, 0)),            # b1
                pl.BlockSpec((Cout, 9 * C), lambda n: (0, 0)),        # w2 folded
                pl.BlockSpec((Cout, 1), lambda n: (0, 0)),            # b2
            ],
            out_specs=pl.BlockSpec((None, Cout, HW), lambda n: (n, 0, 0)),
            scratch_shapes=[
                pltpu.VMEM((C, 128 + HW + 128), jnp.float32),         # padded row buffer
                pltpu.VMEM((9 * C, HW), jnp.float32),                 # im2col slab
            ],
        ),
        compiler_params=pltpu.CompilerParams(dimension_semantics=("parallel",)),
        cost_estimate=pl.CostEstimate(flops=flops, transcendentals=0,
                                      bytes_accessed=bytes_accessed),
    )(x_flat, masks, w1f, b1r, w2f, b2r)

    return out_flat.reshape(N, Cout, H, W)


def resblock_reference(x_nchw, w1, b1, w2, b2, res_scale=1.0):
    """Pure-JAX f32 reference (XLA convolutions, NCHW) for correctness checking."""
    dn = lax.conv_dimension_numbers(x_nchw.shape, w1.shape, ("NCHW", "HWIO", "NCHW"))
    h = lax.conv_general_dilated(x_nchw, w1, (1, 1), "SAME", dimension_numbers=dn)
    h = jnp.maximum(h + b1.reshape(1, -1, 1, 1), 0.0)
    o = lax.conv_general_dilated(h, w2, (1, 1), "SAME", dimension_numbers=dn)
    o = o + b2.reshape(1, -1, 1, 1)
    return o * res_scale + x_nchw


if __name__ == "__main__":
    N, C, H, W = 2, 4, 16, 16
    res_scale = 1.0

    key = jax.random.PRNGKey(0)
    kx, kw1, kb1, kw2, kb2 = jax.random.split(key, 5)
    x = jax.random.normal(kx, (N, C, H, W), jnp.float32)
    w1 = jax.random.normal(kw1, (3, 3, C, C), jnp.float32) * 0.1
    b1 = jax.random.normal(kb1, (C,), jnp.float32) * 0.1
    w2 = jax.random.normal(kw2, (3, 3, C, C), jnp.float32) * 0.1
    b2 = jax.random.normal(kb2, (C,), jnp.float32) * 0.1

    out = resblock_pallas(x, w1, b1, w2, b2, res_scale=res_scale)
    out = jax.block_until_ready(out)

    ref = resblock_reference(x, w1, b1, w2, b2, res_scale)
    assert out.shape == (N, C, H, W), out.shape
    err = float(jnp.max(jnp.abs(out - ref)))
    # All-f32 path; tolerance covers possible reduced-precision MXU passes for f32 dots.
    assert err < 2e-2, f"max abs err {err}"
    print("KERNEL_OK")
</pallas_src>

<mosaic_0001>
module attributes {stable_mosaic.version = 11 : i64} {
  func.func @_resblock_kernel(%arg0: i32, %arg1: memref<1x4x256xf32, #tpu.memory_space<vmem>>, %arg2: memref<2x256xf32, #tpu.memory_space<vmem>>, %arg3: memref<4x36xf32, #tpu.memory_space<vmem>>, %arg4: memref<4x1xf32, #tpu.memory_space<vmem>>, %arg5: memref<4x36xf32, #tpu.memory_space<vmem>>, %arg6: memref<4x1xf32, #tpu.memory_space<vmem>>, %arg7: memref<1x4x256xf32, #tpu.memory_space<vmem>>, %arg8: memref<4x512xf32, #tpu.memory_space<vmem>>, %arg9: memref<36x256xf32, #tpu.memory_space<vmem>>) attributes {dimension_semantics = [#tpu.dimension_semantics<parallel>], iteration_bounds = array<i64: 2>, scalar_prefetch = 0 : i64, scratch_operands = 2 : i64, tpu.core_type = #tpu.core_type<tc>, window_params = [{transform_indices = @transform_0, window_bounds = array<i64: 1, 4, 256>}, {pipeline_mode = #tpu.pipeline_mode<synchronous>, transform_indices = @transform_1, window_bounds = array<i64: 2, 256>}, {pipeline_mode = #tpu.pipeline_mode<synchronous>, transform_indices = @transform_2, window_bounds = array<i64: 4, 36>}, {pipeline_mode = #tpu.pipeline_mode<synchronous>, transform_indices = @transform_3, window_bounds = array<i64: 4, 1>}, {pipeline_mode = #tpu.pipeline_mode<synchronous>, transform_indices = @transform_4, window_bounds = array<i64: 4, 36>}, {pipeline_mode = #tpu.pipeline_mode<synchronous>, transform_indices = @transform_5, window_bounds = array<i64: 4, 1>}, {transform_indices = @transform_6, window_bounds = array<i64: 1, 4, 256>}]} {
    %c0 = arith.constant 0 : index
    %c0_0 = arith.constant 0 : index
    %0 = vector.load %arg2[%c0, %c0_0] : memref<2x256xf32, #tpu.memory_space<vmem>>, vector<1x256xf32>
    %c1 = arith.constant 1 : index
    %c0_1 = arith.constant 0 : index
    %1 = vector.load %arg2[%c1, %c0_1] : memref<2x256xf32, #tpu.memory_space<vmem>>, vector<1x256xf32>
    %cst = arith.constant 0.000000e+00 : f32
    %2 = vector.broadcast %cst : f32 to vector<4x128xf32>
    %c0_2 = arith.constant 0 : index
    %c0_3 = arith.constant 0 : index
    %3 = vector.load %arg8[%c0_2, %c0_3] : memref<4x512xf32, #tpu.memory_space<vmem>>, vector<4x128xf32>
    tpu.vector_store %arg8[%c0_2, %c0_3], %2 {strides = array<i32>} : memref<4x512xf32, #tpu.memory_space<vmem>>, vector<4x128xf32>,
    %c0_4 = arith.constant 0 : index
    %c384 = arith.constant 384 : index
    %4 = vector.load %arg8[%c0_4, %c384] : memref<4x512xf32, #tpu.memory_space<vmem>>, vector<4x128xf32>
    tpu.vector_store %arg8[%c0_4, %c384], %2 {strides = array<i32>} : memref<4x512xf32, #tpu.memory_space<vmem>>, vector<4x128xf32>,
    %c0_5 = arith.constant 0 : index
    %c0_6 = arith.constant 0 : index
    %c0_7 = arith.constant 0 : index
    %5 = vector.load %arg1[%c0_5, %c0_6, %c0_7] : memref<1x4x256xf32, #tpu.memory_space<vmem>>, vector<1x4x256xf32>
    %6 = vector.shape_cast %5 : vector<1x4x256xf32> to vector<4x256xf32>
    %c0_8 = arith.constant 0 : index
    %c128 = arith.constant 128 : index
    %7 = vector.load %arg8[%c0_8, %c128] : memref<4x512xf32, #tpu.memory_space<vmem>>, vector<4x256xf32>
    tpu.vector_store %arg8[%c0_8, %c128], %6 {strides = array<i32>} : memref<4x512xf32, #tpu.memory_space<vmem>>, vector<4x256xf32>,
    %c0_9 = arith.constant 0 : index
    %c111 = arith.constant 111 : index
    %8 = vector.load %arg8[%c0_9, %c111] : memref<4x512xf32, #tpu.memory_space<vmem>>, vector<4x256xf32>
    %9 = vector.broadcast %0 : vector<1x256xf32> to vector<4x256xf32>
    %10 = arith.mulf %8, %9 : vector<4x256xf32>
    %c0_10 = arith.constant 0 : index
    %c0_11 = arith.constant 0 : index
    %11 = vector.load %arg9[%c0_10, %c0_11] : memref<36x256xf32, #tpu.memory_space<vmem>>, vector<4x256xf32>
    tpu.vector_store %arg9[%c0_10, %c0_11], %10 {strides = array<i32>} : memref<36x256xf32, #tpu.memory_space<vmem>>, vector<4x256xf32>,
    %c0_12 = arith.constant 0 : index
    %c112 = arith.constant 112 : index
    %12 = vector.load %arg8[%c0_12, %c112] : memref<4x512xf32, #tpu.memory_space<vmem>>, vector<4x256xf32>
    %c4 = arith.constant 4 : index
    %c0_13 = arith.constant 0 : index
    %13 = vector.load %arg9[%c4, %c0_13] : memref<36x256xf32, #tpu.memory_space<vmem>>, vector<4x256xf32>
    tpu.vector_store %arg9[%c4, %c0_13], %12 {strides = array<i32>} : memref<36x256xf32, #tpu.memory_space<vmem>>, vector<4x256xf32>,
    %c0_14 = arith.constant 0 : index
    %c113 = arith.constant 113 : index
    %14 = vector.load %arg8[%c0_14, %c113] : memref<4x512xf32, #tpu.memory_space<vmem>>, vector<4x256xf32>
    %15 = vector.broadcast %1 : vector<1x256xf32> to vector<4x256xf32>
    %16 = arith.mulf %14, %15 : vector<4x256xf32>
    %c8 = arith.constant 8 : index
    %c0_15 = arith.constant 0 : index
    %17 = vector.load %arg9[%c8, %c0_15] : memref<36x256xf32, #tpu.memory_space<vmem>>, vector<4x256xf32>
    tpu.vector_store %arg9[%c8, %c0_15], %16 {strides = array<i32>} : memref<36x256xf32, #tpu.memory_space<vmem>>, vector<4x256xf32>,
    %c0_16 = arith.constant 0 : index
    %c127 = arith.constant 127 : index
    %18 = vector.load %arg8[%c0_16, %c127] : memref<4x512xf32, #tpu.memory_space<vmem>>, vector<4x256xf32>
    %19 = vector.broadcast %0 : vector<1x256xf32> to vector<4x256xf32>
    %20 = arith.mulf %18, %19 : vector<4x256xf32>
    %c12 = arith.constant 12 : index
    %c0_17 = arith.constant 0 : index
    %21 = vector.load %arg9[%c12, %c0_17] : memref<36x256xf32, #tpu.memory_space<vmem>>, vector<4x256xf32>
    tpu.vector_store %arg9[%c12, %c0_17], %20 {strides = array<i32>} : memref<36x256xf32, #tpu.memory_space<vmem>>, vector<4x256xf32>,
    %c0_18 = arith.constant 0 : index
    %c128_19 = arith.constant 128 : index
    %22 = vector.load %arg8[%c0_18, %c128_19] : memref<4x512xf32, #tpu.memory_space<vmem>>, vector<4x256xf32>
    %c16 = arith.constant 16 : index
    %c0_20 = arith.constant 0 : index
    %23 = vector.load %arg9[%c16, %c0_20] : memref<36x256xf32, #tpu.memory_space<vmem>>, vector<4x256xf32>
    tpu.vector_store %arg9[%c16, %c0_20], %22 {strides = array<i32>} : memref<36x256xf32, #tpu.memory_space<vmem>>, vector<4x256xf32>,
    %c0_21 = arith.constant 0 : index
    %c129 = arith.constant 129 : index
    %24 = vector.load %arg8[%c0_21, %c129] : memref<4x512xf32, #tpu.memory_space<vmem>>, vector<4x256xf32>
    %25 = vector.broadcast %1 : vector<1x256xf32> to vector<4x256xf32>
    %26 = arith.mulf %24, %25 : vector<4x256xf32>
    %c20 = arith.constant 20 : index
    %c0_22 = arith.constant 0 : index
    %27 = vector.load %arg9[%c20, %c0_22] : memref<36x256xf32, #tpu.memory_space<vmem>>, vector<4x256xf32>
    tpu.vector_store %arg9[%c20, %c0_22], %26 {strides = array<i32>} : memref<36x256xf32, #tpu.memory_space<vmem>>, vector<4x256xf32>,
    %c0_23 = arith.constant 0 : index
    %c143 = arith.constant 143 : index
    %28 = vector.load %arg8[%c0_23, %c143] : memref<4x512xf32, #tpu.memory_space<vmem>>, vector<4x256xf32>
    %29 = vector.broadcast %0 : vector<1x256xf32> to vector<4x256xf32>
    %30 = arith.mulf %28, %29 : vector<4x256xf32>
    %c24 = arith.constant 24 : index
    %c0_24 = arith.constant 0 : index
    %31 = vector.load %arg9[%c24, %c0_24] : memref<36x256xf32, #tpu.memory_space<vmem>>, vector<4x256xf32>
    tpu.vector_store %arg9[%c24, %c0_24], %30 {strides = array<i32>} : memref<36x256xf32, #tpu.memory_space<vmem>>, vector<4x256xf32>,
    %c0_25 = arith.constant 0 : index
    %c144 = arith.constant 144 : index
    %32 = vector.load %arg8[%c0_25, %c144] : memref<4x512xf32, #tpu.memory_space<vmem>>, vector<4x256xf32>
    %c28 = arith.constant 28 : index
    %c0_26 = arith.constant 0 : index
    %33 = vector.load %arg9[%c28, %c0_26] : memref<36x256xf32, #tpu.memory_space<vmem>>, vector<4x256xf32>
    tpu.vector_store %arg9[%c28, %c0_26], %32 {strides = array<i32>} : memref<36x256xf32, #tpu.memory_space<vmem>>, vector<4x256xf32>,
    %c0_27 = arith.constant 0 : index
    %c145 = arith.constant 145 : index
    %34 = vector.load %arg8[%c0_27, %c145] : memref<4x512xf32, #tpu.memory_space<vmem>>, vector<4x256xf32>
    %35 = vector.broadcast %1 : vector<1x256xf32> to vector<4x256xf32>
    %36 = arith.mulf %34, %35 : vector<4x256xf32>
    %c32 = arith.constant 32 : index
    %c0_28 = arith.constant 0 : index
    %37 = vector.load %arg9[%c32, %c0_28] : memref<36x256xf32, #tpu.memory_space<vmem>>, vector<4x256xf32>
    tpu.vector_store %arg9[%c32, %c0_28], %36 {strides = array<i32>} : memref<36x256xf32, #tpu.memory_space<vmem>>, vector<4x256xf32>,
    %c0_29 = arith.constant 0 : index
    %c0_30 = arith.constant 0 : index
    %38 = vector.load %arg3[%c0_29, %c0_30] : memref<4x36xf32, #tpu.memory_space<vmem>>, vector<4x36xf32>
    %c0_31 = arith.constant 0 : index
    %c0_32 = arith.constant 0 : index
    %39 = vector.load %arg9[%c0_31, %c0_32] : memref<36x256xf32, #tpu.memory_space<vmem>>, vector<36x256xf32>
    %cst_33 = arith.constant dense<0.000000e+00> : vector<4x256xf32>
    %40 = tpu.matmul %38, %39, %cst_33 {dimension_numbers = #tpu.dot_dimension_numbers<[1], [0], [0], [1], [0, 0, 1, 1], [], []>} : vector<4x36xf32>, vector<36x256xf32>, vector<4x256xf32> -> vector<4x256xf32>
    %c0_34 = arith.constant 0 : index
    %c0_35 = arith.constant 0 : index
    %41 = vector.load %arg4[%c0_34, %c0_35] : memref<4x1xf32, #tpu.memory_space<vmem>>, vector<4x1xf32>
    %42 = vector.broadcast %41 : vector<4x1xf32> to vector<4x256xf32>
    %43 = arith.addf %40, %42 : vector<4x256xf32>
    %cst_36 = arith.constant 0.000000e+00 : f32
    %44 = vector.broadcast %cst_36 : f32 to vector<4x256xf32>
    %45 = arith.maximumf %43, %44 : vector<4x256xf32>
    %c0_37 = arith.constant 0 : index
    %c128_38 = arith.constant 128 : index
    %46 = vector.load %arg8[%c0_37, %c128_38] : memref<4x512xf32, #tpu.memory_space<vmem>>, vector<4x256xf32>
    tpu.vector_store %arg8[%c0_37, %c128_38], %45 {strides = array<i32>} : memref<4x512xf32, #tpu.memory_space<vmem>>, vector<4x256xf32>,
    %c0_39 = arith.constant 0 : index
    %c111_40 = arith.constant 111 : index
    %47 = vector.load %arg8[%c0_39, %c111_40] : memref<4x512xf32, #tpu.memory_space<vmem>>, vector<4x256xf32>
    %48 = vector.broadcast %0 : vector<1x256xf32> to vector<4x256xf32>
    %49 = arith.mulf %47, %48 : vector<4x256xf32>
    %c0_41 = arith.constant 0 : index
    %c0_42 = arith.constant 0 : index
    %50 = vector.load %arg9[%c0_41, %c0_42] : memref<36x256xf32, #tpu.memory_space<vmem>>, vector<4x256xf32>
    tpu.vector_store %arg9[%c0_41, %c0_42], %49 {strides = array<i32>} : memref<36x256xf32, #tpu.memory_space<vmem>>, vector<4x256xf32>,
    %c0_43 = arith.constant 0 : index
    %c112_44 = arith.constant 112 : index
    %51 = vector.load %arg8[%c0_43, %c112_44] : memref<4x512xf32, #tpu.memory_space<vmem>>, vector<4x256xf32>
    %c4_45 = arith.constant 4 : index
    %c0_46 = arith.constant 0 : index
    %52 = vector.load %arg9[%c4_45, %c0_46] : memref<36x256xf32, #tpu.memory_space<vmem>>, vector<4x256xf32>
    tpu.vector_store %arg9[%c4_45, %c0_46], %51 {strides = array<i32>} : memref<36x256xf32, #tpu.memory_space<vmem>>, vector<4x256xf32>,
    %c0_47 = arith.constant 0 : index
    %c113_48 = arith.constant 113 : index
    %53 = vector.load %arg8[%c0_47, %c113_48] : memref<4x512xf32, #tpu.memory_space<vmem>>, vector<4x256xf32>
    %54 = vector.broadcast %1 : vector<1x256xf32> to vector<4x256xf32>
    %55 = arith.mulf %53, %54 : vector<4x256xf32>
    %c8_49 = arith.constant 8 : index
    %c0_50 = arith.constant 0 : index
    %56 = vector.load %arg9[%c8_49, %c0_50] : memref<36x256xf32, #tpu.memory_space<vmem>>, vector<4x256xf32>
    tpu.vector_store %arg9[%c8_49, %c0_50], %55 {strides = array<i32>} : memref<36x256xf32, #tpu.memory_space<vmem>>, vector<4x256xf32>,
    %c0_51 = arith.constant 0 : index
    %c127_52 = arith.constant 127 : index
    %57 = vector.load %arg8[%c0_51, %c127_52] : memref<4x512xf32, #tpu.memory_space<vmem>>, vector<4x256xf32>
    %58 = vector.broadcast %0 : vector<1x256xf32> to vector<4x256xf32>
    %59 = arith.mulf %57, %58 : vector<4x256xf32>
    %c12_53 = arith.constant 12 : index
    %c0_54 = arith.constant 0 : index
    %60 = vector.load %arg9[%c12_53, %c0_54] : memref<36x256xf32, #tpu.memory_space<vmem>>, vector<4x256xf32>
    tpu.vector_store %arg9[%c12_53, %c0_54], %59 {strides = array<i32>} : memref<36x256xf32, #tpu.memory_space<vmem>>, vector<4x256xf32>,
    %c0_55 = arith.constant 0 : index
    %c128_56 = arith.constant 128 : index
    %61 = vector.load %arg8[%c0_55, %c128_56] : memref<4x512xf32, #tpu.memory_space<vmem>>, vector<4x256xf32>
    %c16_57 = arith.constant 16 : index
    %c0_58 = arith.constant 0 : index
    %62 = vector.load %arg9[%c16_57, %c0_58] : memref<36x256xf32, #tpu.memory_space<vmem>>, vector<4x256xf32>
    tpu.vector_store %arg9[%c16_57, %c0_58], %61 {strides = array<i32>} : memref<36x256xf32, #tpu.memory_space<vmem>>, vector<4x256xf32>,
    %c0_59 = arith.constant 0 : index
    %c129_60 = arith.constant 129 : index
    %63 = vector.load %arg8[%c0_59, %c129_60] : memref<4x512xf32, #tpu.memory_space<vmem>>, vector<4x256xf32>
    %64 = vector.broadcast %1 : vector<1x256xf32> to vector<4x256xf32>
    %65 = arith.mulf %63, %64 : vector<4x256xf32>
    %c20_61 = arith.constant 20 : index
    %c0_62 = arith.constant 0 : index
    %66 = vector.load %arg9[%c20_61, %c0_62] : memref<36x256xf32, #tpu.memory_space<vmem>>, vector<4x256xf32>
    tpu.vector_store %arg9[%c20_61, %c0_62], %65 {strides = array<i32>} : memref<36x256xf32, #tpu.memory_space<vmem>>, vector<4x256xf32>,
    %c0_63 = arith.constant 0 : index
    %c143_64 = arith.constant 143 : index
    %67 = vector.load %arg8[%c0_63, %c143_64] : memref<4x512xf32, #tpu.memory_space<vmem>>, vector<4x256xf32>
    %68 = vector.broadcast %0 : vector<1x256xf32> to vector<4x256xf32>
    %69 = arith.mulf %67, %68 : vector<4x256xf32>
    %c24_65 = arith.constant 24 : index
    %c0_66 = arith.constant 0 : index
    %70 = vector.load %arg9[%c24_65, %c0_66] : memref<36x256xf32, #tpu.memory_space<vmem>>, vector<4x256xf32>
    tpu.vector_store %arg9[%c24_65, %c0_66], %69 {strides = array<i32>} : memref<36x256xf32, #tpu.memory_space<vmem>>, vector<4x256xf32>,
    %c0_67 = arith.constant 0 : index
    %c144_68 = arith.constant 144 : index
    %71 = vector.load %arg8[%c0_67, %c144_68] : memref<4x512xf32, #tpu.memory_space<vmem>>, vector<4x256xf32>
    %c28_69 = arith.constant 28 : index
    %c0_70 = arith.constant 0 : index
    %72 = vector.load %arg9[%c28_69, %c0_70] : memref<36x256xf32, #tpu.memory_space<vmem>>, vector<4x256xf32>
    tpu.vector_store %arg9[%c28_69, %c0_70], %71 {strides = array<i32>} : memref<36x256xf32, #tpu.memory_space<vmem>>, vector<4x256xf32>,
    %c0_71 = arith.constant 0 : index
    %c145_72 = arith.constant 145 : index
    %73 = vector.load %arg8[%c0_71, %c145_72] : memref<4x512xf32, #tpu.memory_space<vmem>>, vector<4x256xf32>
    %74 = vector.broadcast %1 : vector<1x256xf32> to vector<4x256xf32>
    %75 = arith.mulf %73, %74 : vector<4x256xf32>
    %c32_73 = arith.constant 32 : index
    %c0_74 = arith.constant 0 : index
    %76 = vector.load %arg9[%c32_73, %c0_74] : memref<36x256xf32, #tpu.memory_space<vmem>>, vector<4x256xf32>
    tpu.vector_store %arg9[%c32_73, %c0_74], %75 {strides = array<i32>} : memref<36x256xf32, #tpu.memory_space<vmem>>, vector<4x256xf32>,
    %c0_75 = arith.constant 0 : index
    %c0_76 = arith.constant 0 : index
    %77 = vector.load %arg5[%c0_75, %c0_76] : memref<4x36xf32, #tpu.memory_space<vmem>>, vector<4x36xf32>
    %c0_77 = arith.constant 0 : index
    %c0_78 = arith.constant 0 : index
    %78 = vector.load %arg9[%c0_77, %c0_78] : memref<36x256xf32, #tpu.memory_space<vmem>>, vector<36x256xf32>
    %cst_79 = arith.constant dense<0.000000e+00> : vector<4x256xf32>
    %79 = tpu.matmul %77, %78, %cst_79 {dimension_numbers = #tpu.dot_dimension_numbers<[1], [0], [0], [1], [0, 0, 1, 1], [], []>} : vector<4x36xf32>, vector<36x256xf32>, vector<4x256xf32> -> vector<4x256xf32>
    %c0_80 = arith.constant 0 : index
    %c0_81 = arith.constant 0 : index
    %80 = vector.load %arg6[%c0_80, %c0_81] : memref<4x1xf32, #tpu.memory_space<vmem>>, vector<4x1xf32>
    %81 = vector.broadcast %80 : vector<4x1xf32> to vector<4x256xf32>
    %82 = arith.addf %79, %81 : vector<4x256xf32>
    %cst_82 = arith.constant 1.000000e+00 : f32
    %83 = vector.broadcast %cst_82 : f32 to vector<4x256xf32>
    %84 = arith.mulf %82, %83 : vector<4x256xf32>
    %85 = arith.addf %84, %6 : vector<4x256xf32>
    %c0_83 = arith.constant 0 : index
    %c0_84 = arith.constant 0 : index
    %c0_85 = arith.constant 0 : index
    %86 = vector.load %arg7[%c0_83, %c0_84, %c0_85] : memref<1x4x256xf32, #tpu.memory_space<vmem>>, vector<1x4x256xf32>
    %87 = vector.shape_cast %86 : vector<1x4x256xf32> to vector<4x256xf32>
    %88 = vector.shape_cast %85 : vector<4x256xf32> to vector<1x4x256xf32>
    tpu.vector_store %arg7[%c0_83, %c0_84, %c0_85], %88 {strides = array<i32>} : memref<1x4x256xf32, #tpu.memory_space<vmem>>, vector<1x4x256xf32>,
    return
  }
  func.func @transform_0(%arg0: i32) -> (i32, i32, i32) {
    %c0_i32 = arith.constant 0 : i32
    %c0_i32_0 = arith.constant 0 : i32
    %c0_i32_1 = arith.constant 0 : i32
    return %arg0, %c0_i32, %c0_i32_0 : i32, i32, i32
  }
  func.func @transform_1(%arg0: i32) -> (i32, i32) {
    %c0_i32 = arith.constant 0 : i32
    %c0_i32_0 = arith.constant 0 : i32
    %c0_i32_1 = arith.constant 0 : i32
    return %c0_i32, %c0_i32_0 : i32, i32
  }
  func.func @transform_2(%arg0: i32) -> (i32, i32) {
    %c0_i32 = arith.constant 0 : i32
    %c0_i32_0 = arith.constant 0 : i32
    %c0_i32_1 = arith.constant 0 : i32
    return %c0_i32, %c0_i32_0 : i32, i32
  }
  func.func @transform_3(%arg0: i32) -> (i32, i32) {
    %c0_i32 = arith.constant 0 : i32
    %c0_i32_0 = arith.constant 0 : i32
    %c0_i32_1 = arith.constant 0 : i32
    return %c0_i32, %c0_i32_0 : i32, i32
  }
  func.func @transform_4(%arg0: i32) -> (i32, i32) {
    %c0_i32 = arith.constant 0 : i32
    %c0_i32_0 = arith.constant 0 : i32
    %c0_i32_1 = arith.constant 0 : i32
    return %c0_i32, %c0_i32_0 : i32, i32
  }
  func.func @transform_5(%arg0: i32) -> (i32, i32) {
    %c0_i32 = arith.constant 0 : i32
    %c0_i32_0 = arith.constant 0 : i32
    %c0_i32_1 = arith.constant 0 : i32
    return %c0_i32, %c0_i32_0 : i32, i32
  }
  func.func @transform_6(%arg0: i32) -> (i32, i32, i32) {
    %c0_i32 = arith.constant 0 : i32
    %c0_i32_0 = arith.constant 0 : i32
    %c0_i32_1 = arith.constant 0 : i32
    return %arg0, %c0_i32, %c0_i32_0 : i32, i32, i32
  }
}

</mosaic_0001>

<bundles_post_ra>
// kernel: tpu_custom_call.1
= control target key start
LH: loop header
LB: loop body
LE: loop exit
PB: predicated region body
PF: predicated region fallthrough
CT: control target
= control target key end

     0   :  { %11 = vsyncpa [#allocation5], 0  ;;  %s1555_s0 = inlined_call_operand.hbm [shape: f32[2,4,256], index: 0, kind: input, shape index: {}]   ;;  %s1556_s1 = inlined_call_operand.vmem [shape: f32[2,256], index: 1, kind: input, shape index: {}]   ;;  %s1557_s2 = inlined_call_operand.vmem [shape: f32[4,36], index: 2, kind: input, shape index: {}]   ;;  %s1558_s3 = inlined_call_operand.vmem [shape: f32[4,1], index: 3, kind: input, shape index: {}]   ;;  %s1559_s4 = inlined_call_operand.vmem [shape: f32[4,36], index: 4, kind: input, shape index: {}]   ;;  %s1560_s5 = inlined_call_operand.vmem [shape: f32[4,1], index: 5, kind: input, shape index: {}]   ;;  %s1561_s6 = inlined_call_operand.hbm [shape: f32[2,4,256], index: 6, kind: output, shape index: {}]  }
   0x1   :  { %13 = vsyncpa [#allocation5 + $0x1], 0 }
   0x2   :  { %14 = vsyncpa [#allocation6], 0 }
   0x3   :  { %16 = vsyncpa [#allocation6 + $0x1], 0  ;;  %s1204_s21 = smov 0   ;;  %s1206_s22 = smov 0  }
   0x4   :  { %s1208_s23 = smov 0   ;;  %s1210_s24 = smov 0  }
   0x5 LB: > { %s1225_s25 = sadd.s32 4294967295, %s1155_s24   ;;  %s953_s26 = sadd.s32 4294967294, %s1155_s24   ;;  %s1155_s24 = sphi %s1210_s24, %s1576_s24   ;;  %s1151_s23 = sphi %s1208_s23, %s1575_s23   ;;  %s1147_s22 = sphi %s1206_s22, %s1574_s22   ;;  %s1143_s21 = sphi %s1204_s21, %s1573_s21  }
   0x6   : > { %s1229_s27 = sadd.s32 1, %s1155_s24   ;;  %s29_s28 = sadd.s32 1, %s1151_s23 }
   0x7   : > { %s26_s29 = ssub.s32 %s1155_s24, %s1229_s27  ;;  %p36_p0 = scmp.ne.s32.totalorder %s1151_s23, %s1147_s22 }
   0x8   : > { %p27_p1 = scmp.eq.s32.totalorder %s26_s29, 0  ;;  %p37_p2 = scmp.eq.s32.totalorder %s1155_s24, 0 }
   0x9   : > { %p42_p3 = scmp.ne.s32.totalorder %s1147_s22, %s1143_s21  ;;  %p43_p4 = scmp.eq.s32.totalorder %s1225_s25, 0 }
   0xa   : > { %s1241_s30 = scalar_select %p27_p1, %s1151_s23, %s29_s28  }
   0xb   : > { %p1243_p5 = por %p37_p2, %p36_p0  ;;  %p1247_p6 = por %p43_p4, %p42_p3 }
   0xc   : > { %p171_p7 = scmp.eq.s32.totalorder %s1225_s25, 1  ;;  %p177_p8 = scmp.eq.s32.totalorder %s953_s26, 1 }
   0xd   : > { %p1004_p10 = scmp.lt.s32.totalorder %s1155_s24, 2  ;;  %s212_s11 = sand.u32 1, %s1151_s23  }
   0xe   : > { %p1254_p11 = por %p171_p7, %p36_p0  ;;  %p1258_p12 = por %p177_p8, %p42_p3 }
   0xf   : > { %s974_s12 = sshll.u32 %s1155_s24, 7  ;;  %s956_s13 = sshll.u32 %s212_s11, 3 }
  0x10   : > { %s1565_s9 = scalar_select %p1254_p11, 1, 0 }
  0x11   : > { %s1566_s10 = scalar_select %p1258_p12, 1, 0 }
  0x12   : > { %s1267_s16 = scalar_lea.hbm %s1555_s0, %s974_s12  ;;  %s216_s17 = scalar_lea.vmem [#allocation4], %s956_s13 }
  0x13   : > { %s224_s18 = sshll.u32 %s216_s17, 4  ;;  %p1271_p13 = pnand %p1004_p10, %p1243_p5  ;;  %s1275_s18 = int_to_ptr.vmem [resolvable:$true] %s224_s18 }
  0x14   : > { %s213_s20 = scalar_lea.sflag [#allocation5], %s212_s11  ;;  %s1059_s26 = scalar_lea.hbm %s1267_s16, 128 }
  0x15   : > { %p1060_p2 = scmp.ne.s32.totalorder %s1267_s16, %s1059_s26  ;;  %p1061_p3 = pneg %p1271_p13 }
  0x16   : > { %s1064_s7 = scalar_lea.hbm %s1555_s0, 256  ;;  %p1065_p5 = scmp.lt.u32.totalorder %s1267_s16, %s1555_s0 }
  0x17   : > { %p1062_p4 = pnand %p1061_p3, %p1060_p2  ;;  %p1066_p8 = scmp.lt.u32.totalorder %s1064_s7, %s1059_s26 }
  0x18   : > { %p1068_p9 = scmp.lt.u32.totalorder %s1059_s26, %s1267_s16 }
  0x19   : > { %p1063_p7 = pneg %p1062_p4  ;;  %p1067_p10 = por %p1066_p8, %p1065_p5 }
  0x1b   : > { %p1069_p0 = por %p1068_p9, %p1067_p10 }
  0x1d   : > { %p1070_p1 = pnand %p1069_p0, %p1063_p7 }
  0x1f   : > { %1073 = shalt.err (!%p1070_p1)
}
  0x20   : > { %s1074_s11 = scalar_lea.vmem %s1275_s18, 128  ;;  %s1157_s14 = smov [#allocation4]  }
  0x21   : > { %p1075_p2 = scmp.ne.s32.totalorder %s1275_s18, %s1074_s11  ;;  %s1079_s15 = sshll.u32 %s1157_s14, 4  ;;  %s1080_s15 = int_to_ptr.vmem [resolvable:$false] %s1079_s15 }
  0x22   : > { %s1081_s17 = scalar_lea.vmem %s1080_s15, 256  ;;  %p1082_p11 = scmp.lt.s32.totalorder %s1275_s18, %s1080_s15 }
  0x23   : > { %p1077_p4 = pnand %p1075_p2, %p1061_p3  ;;  %p1083_p5 = scmp.lt.s32.totalorder %s1081_s17, %s1074_s11 }
  0x25   : > { %p1078_p12 = pneg %p1077_p4  ;;  %p1084_p8 = por %p1083_p5, %p1082_p11 }
  0x27   : > { %p1085_p9 = pnand %p1084_p8, %p1078_p12 }
  0x29   : > { %1088 = shalt.err (!%p1085_p9)
}
  0x2a   : > { %999 = dma.hbm_to_vmem [thread:$0]  (!%p1271_p13), %s1267_s16, 128, %s1275_s18, %s213_s20  }
  0x2b   : > { %p1568_p0 = scmp.lt.s32.totalorder %s1155_s24, 3  ;;  %p1569_p1 = scmp.ge.s32.totalorder %s1155_s24, 1 }
  0x2d   : > { %p230_p3 = pnand %p1569_p1, %p1568_p0 }
  0x2e   : > { %s1309_s26 = sand.u32 (!%p230_p3), 1, %s1147_s22  }
  0x2f   : > { %233 = sbr.rel (%p230_p3) target bundleno = 975 (0x3cf), region = 44  ;;  %s960_s28 = sshll.u32 (!%p230_p3), %s1309_s26, 3 }
  0x30   : > { %s236_s29 = scalar_lea.sflag (!%p230_p3), [#allocation5], %s1309_s26  ;;  %s239_s19 = scalar_lea.vmem (!%p230_p3), [#allocation4], %s960_s28 }
  0x36   : > { %1134 = dma.done.wait (%p1247_p6), %s236_s29, 128  }
  0x37   : > { %1136 = vsyncadd (%p1247_p6), %s236_s29, 4294967168  ;;  %v278_v0 = vlaneseq  ;;  %v1158_v1 = vmov 0.0   ;;  %v268_v5 = vld [vmem:[%s1556_s1] ss:$2 sm:$0x3]  ;;  %s1159_s8 = smov 127  }
  0x38   : > { %271 = vst [vmem:[#allocation2] sm:$0xf] %v1158_v1  ;;  %272 = vst [vmem:[#allocation2 + $0xc] sm:$0xf] %v1158_v1  ;;  %589 = vmatprep.mubr.f32.mxu0 %v1158_v1  ;;  %851 = vmatprep.mubr.f32.mxu1 %v1158_v1  ;;  %v1325_v11 = vld [vmem:[%s239_s19] sm:$0xff]  ;;  %s1160_s12 = smov 111  }
  0x39   : > { %v279_v2 = vshrl.u32 %v278_v0, 7  ;;  %v962_v6 = vld [vmem:[%s1556_s1 + $0x1] ss:$2 sm:$0x3]  ;;  %274 = vst [vmem:[#allocation2 + $0x4] sm:$0xff] %v1325_v11  ;;  %s1161_s13 = smov 113   ;;  %v1365_v38 = vcombine.high %v1325_v11, %v1325_v11 }
  0x3a   : > { %400 = vst [vmem:[#allocation3 + $0x20] sm:$0xf] %v1325_v11  ;;  %s1162_s11 = smov 15   ;;  %s1163_s14 = smov 1   ;;  %vm373_vm0 = vcmask 1039360   ;;  %vm290_vm1 = vcmask 908288  }
  0x3b   : > { %v280_v3 = vsub.s32 0, %v279_v2  ;;  %v284_v4 = vsub.s32 1, %v279_v2  ;;  %s1164_s15 = smov 17   ;;  %s1165_s17 = smov 16   ;;  %vm346_vm2 = vcmask 924672   ;;  %vm389_vm3 = vcmask 7168  }
  0x3c   : > { %s1166_s29 = smov 112   ;;  %vm324_vm4 = vcmask 130048   ;;  %401 = vst [vmem:[#allocation3 + $0x28] sm:$0xf] %v1365_v38  ;;  %vm361_vm5 = vcmask 121856   ;;  %vm465_vm6 = vcmask 916480  }
  0x3d   : > { %v281_v7 = vrot.slane %v268_v5, %v280_v3  ;;  %v285_v8 = vrot.slane %v268_v5, %v284_v4  ;;  %v337_v9 = vrot.slane %v962_v6, %v280_v3  ;;  %v341_v10 = vrot.slane %v962_v6, %v284_v4  ;;  %s869_s16 = scalar_lea.sflag [#allocation6], %s1309_s26  ;;  %p1570_p11 = scmp.ne.s32.totalorder %s1565_s9, 0 }
  0x3e   : > { %vm305_vm7 = vcmask 138240   ;;  %v457_v6 = vcombine.low %v1325_v11, %v1325_v11  ;;  %vm518_vm8 = vcmask 1043456   ;;  %vm514_vm9 = vcmask 293888  }
  0x3f   : > { %v286_v12 = vcombine.low %v281_v7, %v285_v8  ;;  %v342_v13 = vcombine.low %v337_v9, %v341_v10  ;;  %v1051_v17 = vld [vmem:[#allocation2 + $0xc] ss:$0 sps:$4 sm:$0xff]  }
  0x40   : > { %v1049_v14 = vld [vmem:[#allocation2 + $0x8] ss:$0 sps:$4 sm:$0xff]   ;;  %v312_v15 = vld [vmem:[#allocation2] sm:$0xff]  ;;  %v429_v32 = vld [vmem:[#allocation2 + $0xc] sm:$0xf] }
  0x41   : > { %370 = vrot.lane.b32.xlu1 %v286_v12, %s1159_s8  ;;  %287 = vrot.lane.b32.xlu0 %v286_v12, %s1160_s12  ;;  %v316_v16 = vcombine.low %v312_v15, %v312_v15  ;;  %v276_v20 = vld [vmem:[#allocation2 + $0x8] sm:$0xf]  ;;  %v403_v44 = vld [vmem:[#allocation2 + $0xc] sm:$0xf] }
  0x42   : > { %v332_v28 = vld [vmem:[#allocation2 + $0x8] sm:$0xf]  ;;  %v686_v5 = vld [vmem:[#allocation2 + $0xc] sm:$0xf] }
  0x43   : > { %v369_v36 = vld [vmem:[#allocation2 + $0x8] sm:$0xf]  ;;  %v473_v8 = vld [vmem:[#allocation2 + $0xc] sm:$0xf] }
  0x45   : > { %343 = vrot.lane.b32.xlu0 %v342_v13, %s1161_s13  ;;  %430 = vrot.lane.b32.xlu1 %v286_v12, %s1162_s11  ;;  %v706_v12 = vld [vmem:[#allocation2 + $0xc] sm:$0xf] }
  0x49   : > { %404 = vrot.lane.b32.xlu0 %v342_v13, %s1163_s14  ;;  %474 = vrot.lane.b32.xlu1 %v342_v13, %s1164_s15 }
  0x4d   : > { %322 = vrot.lane.b32.xlu1 %v1049_v14, %s1165_s17  ;;  %320 = vrot.lane.b32.xlu0 %v312_v15, %s1165_s17  ;;  %v1167_v14 = vmov 0  }
  0x4e   : > { %1048 = vset.pattern.permute.xlu0 %v1167_v14 }
  0x51   : > { %318 = vrot.lane.b32.xlu1 %v316_v16, %s1165_s17  ;;  %461 = vrot.lane.b32.xlu0 %v1325_v11, %s1166_s29 }
  0x55   : > { %463 = vrot.lane.b32.xlu1 %v1051_v17, %s1166_s29 }
  0xb3   : > { %v371_v18 = vpop.permute.xlu1 %370  ;;  %v288_v19 = vpop.permute.xlu0 %287 }
  0xb4   : > { %v1341_v21 = vrot.slane %v371_v18, 4  ;;  %v1343_v22 = vrot.slane %v288_v19, 4 }
  0xb6   : > { %v1347_v23 = vsel %vm373_vm0, %v1341_v21, %v371_v18  ;;  %v295_v24 = vmul.f32 %v1343_v22, %v276_v20  ;;  %v1353_v29 = vsel %vm290_vm1, %v1343_v22, %v288_v19  ;;  %v378_v42 = vmul.f32 %v1341_v21, %v369_v36 }
  0xb7   : > { %v377_v25 = vmul.f32 %v1347_v23, %v312_v15  ;;  %v344_v26 = vpop.permute.xlu0 %343  ;;  %v431_v27 = vpop.permute.xlu1 %430  ;;  %v294_v34 = vmul.f32 %v312_v15, %v1353_v29 }
  0xb8   : > { %v1355_v30 = vrot.slane %v344_v26, 4  ;;  %303 = vrot.lane.b32.xlu1 %v295_v24, %s1164_s15  ;;  %v1358_v31 = vrot.slane %v431_v27, 4  ;;  %v382_v49 = vcombine.low %v378_v42, %v378_v42 }
  0xb9   : > { %385 = vrot.lane.b32.xlu0 %v377_v25, %s1163_s14  ;;  %v298_v57 = vcombine.high %v294_v34, %v294_v34  ;;  %v381_v62 = vcombine.low %v377_v25, %v377_v25 }
  0xba   : > { %v351_v33 = vmul.f32 %v1355_v30, %v332_v28  ;;  %v1369_v39 = vsel %vm346_vm2, %v1355_v30, %v344_v26  ;;  %v437_v41 = vmul.f32 %v1358_v31, %v429_v32  ;;  %v1394_v59 = vsel %vm361_vm5, %v1358_v31, %v431_v27 }
  0xbb   : > { %v405_v35 = vpop.permute.xlu0 %404  ;;  %v475_v37 = vpop.permute.xlu1 %474  ;;  %v350_v43 = vmul.f32 %v1369_v39, %v312_v15  ;;  %v436_v63 = vmul.f32 %v1394_v59, %v1325_v11  ;;  %v708_v13 = vmul.f32 %v706_v12, %v1358_v31  ;;  %v508_v15 = vld [vmem:[%s1558_s3] sm:$0xf] }
  0xbc   : > { %359 = vrot.lane.b32.xlu1 %v351_v33, %s1162_s11  ;;  %v406_v40 = vrot.slane %v405_v35, 4  ;;  %v1388_v54 = vrot.slane %v475_v37, 4 }
  0xbd   : > { %299 = vrot.lane.b32.xlu0 %v294_v34, %s1164_s15  ;;  %v354_v0 = vcombine.high %v350_v43, %v350_v43  ;;  %v440_v2 = vcombine.high %v436_v63, %v436_v63 }
  0xbe   : > { %v1378_v47 = vsel %vm389_vm3, %v406_v40, %v405_v35  ;;  %v411_v50 = vmul.f32 %v406_v40, %v403_v44  ;;  %v1402_v61 = vsel %vm305_vm7, %v1388_v54, %v475_v37  ;;  %v688_v7 = vmul.f32 %v686_v5, %v406_v40 }
  0xbf   : > { %v323_v45 = vpop.permute.xlu1 %322  ;;  %v321_v46 = vpop.permute.xlu0 %320  ;;  %v410_v51 = vmul.f32 %v1378_v47, %v1325_v11  ;;  %v480_v1 = vmul.f32 %v1402_v61, %v1325_v11  ;;  %v481_v10 = vmul.f32 %v1388_v54, %v473_v8 }
  0xc0   : > { %445 = vrot.lane.b32.xlu1 %v437_v41, %s1161_s13  ;;  %v326_v48 = vsel %vm324_vm4, %v321_v46, %v323_v45  ;;  %v415_v56 = vcombine.low %v411_v50, %v411_v50  ;;  %v692_v9 = vcombine.low %v688_v7, %v688_v7 }
  0xc1   : > { %355 = vrot.lane.b32.xlu0 %v350_v43, %s1162_s11  ;;  %330 = vst [vmem:[#allocation3 + $0x8] sm:$0xf0] %v326_v48  ;;  %v484_v3 = vcombine.high %v480_v1, %v480_v1  ;;  %v414_v4 = vcombine.low %v410_v51, %v410_v51 }
  0xc3   : > { %v319_v52 = vpop.permute.xlu1 %318  ;;  %v1390_v55 = vpop.permute.xlu0 %461 }
  0xc4   : > { %387 = vrot.lane.b32.xlu1 %v382_v49, %s1163_s14  ;;  %v325_v53 = vsel %vm324_vm4, %v319_v52, %v321_v46 }
  0xc5   : > { %418 = vrot.lane.b32.xlu0 %v410_v51, %s1159_s8  ;;  %329 = vst [vmem:[#allocation3] sm:$0xf0] %v325_v53 }
  0xc7   : > { %v464_v58 = vpop.permute.xlu1 %463 }
  0xc8   : > { %420 = vrot.lane.b32.xlu1 %v415_v56, %s1159_s8  ;;  %v467_v60 = vsel %vm465_vm6, %v1390_v55, %v464_v58 }
  0xc9   : > { %301 = vrot.lane.b32.xlu0 %v298_v57, %s1164_s15  ;;  %471 = vst [vmem:[#allocation3 + $0x38] sm:$0xf0] %v467_v60 }
  0xcc   : > { %383 = vrot.lane.b32.xlu1 %v381_v62, %s1163_s14 }
  0xcd   : > { %357 = vrot.lane.b32.xlu0 %v354_v0, %s1162_s11 }
  0xd0   : > { %441 = vrot.lane.b32.xlu1 %v436_v63, %s1161_s13 }
  0xd1   : > { %443 = vrot.lane.b32.xlu0 %v440_v2, %s1161_s13 }
  0xd4   : > { %487 = vrot.lane.b32.xlu1 %v484_v3, %s1160_s12 }
  0xd5   : > { %416 = vrot.lane.b32.xlu0 %v414_v4, %s1159_s8 }
  0xd8   : > { %485 = vrot.lane.b32.xlu1 %v480_v1, %s1160_s12 }
  0xd9   : > { %459 = vrot.lane.b32.xlu0 %v457_v6, %s1166_s29 }
  0xdc   : > { %697 = vrot.lane.b32.xlu1 %v692_v9, %s1159_s8 }
  0xdd   : > { %489 = vrot.lane.b32.xlu0 %v481_v10, %s1160_s12  ;;  %v1054_v10 = vld [vmem:[#allocation2 + $0xc] ss:$0 sps:$4 sm:$0xff]  }
  0xe0   : > { %716 = vrot.lane.b32.xlu1 %v708_v13, %s1161_s13 }
  0xe1   : > { %511 = vperm.xlu0 %1048, %v508_v15  }
  0xe4   : > { %734 = vrot.lane.b32.xlu1 %v1054_v10, %s1166_s29 }
 0x12a   : > { %v304_v16 = vpop.permute.xlu1 %303 }
 0x12b   : > { %v386_v17 = vpop.permute.xlu0 %385 }
 0x12e   : > { %v360_v18 = vpop.permute.xlu1 %359 }
 0x12f   : > { %v300_v19 = vpop.permute.xlu0 %299 }
 0x132   : > { %v446_v20 = vpop.permute.xlu1 %445 }
 0x133   : > { %v356_v24 = vpop.permute.xlu0 %355 }
 0x136   : > { %v388_v25 = vpop.permute.xlu1 %387 }
 0x137   : > { %v391_v26 = vsel %vm389_vm3, %v386_v17, %v388_v25  ;;  %v419_v27 = vpop.permute.xlu0 %418 }
 0x138   : > { %395 = vst [vmem:[#allocation3 + $0x18] sm:$0xf0] %v391_v26 }
 0x13a   : > { %v421_v28 = vpop.permute.xlu1 %420 }
 0x13b   : > { %v423_v31 = vsel %vm373_vm0, %v419_v27, %v421_v28  ;;  %v302_v32 = vpop.permute.xlu0 %301 }
 0x13c   : > { %427 = vst [vmem:[#allocation3 + $0x28] sm:$0xf0] %v423_v31  ;;  %v306_v33 = vsel %vm305_vm7, %v300_v19, %v302_v32  ;;  %v307_v34 = vsel %vm305_vm7, %v302_v32, %v304_v16 }
 0x13d   : > { %310 = vst [vmem:[#allocation3] sm:$0xf] %v306_v33  ;;  %311 = vst [vmem:[#allocation3 + $0x8] sm:$0xf] %v307_v34 }
 0x13e   : > { %v384_v35 = vpop.permute.xlu1 %383 }
 0x13f   : > { %v390_v36 = vsel %vm389_vm3, %v384_v35, %v386_v17  ;;  %v358_v37 = vpop.permute.xlu0 %357 }
 0x140   : > { %394 = vst [vmem:[#allocation3 + $0x10] sm:$0xf0] %v390_v36  ;;  %v362_v40 = vsel %vm361_vm5, %v356_v24, %v358_v37  ;;  %v363_v41 = vsel %vm361_vm5, %v358_v37, %v360_v18 }
 0x141   : > { %366 = vst [vmem:[#allocation3 + $0x10] sm:$0xf] %v362_v40  ;;  %367 = vst [vmem:[#allocation3 + $0x18] sm:$0xf] %v363_v41 }
 0x142   : > { %v442_v42 = vpop.permute.xlu1 %441 }
 0x143   : > { %v444_v43 = vpop.permute.xlu0 %443  ;;  %v503_v0 = vld [vmem:[#allocation3 + $0x28] sm:$0xff] }
 0x144   : > { %v447_v44 = vsel %vm346_vm2, %v442_v42, %v444_v43  ;;  %v448_v45 = vsel %vm346_vm2, %v444_v43, %v446_v20  ;;  %v499_v49 = vld [vmem:[#allocation3 + $0x8] sm:$0xff]  ;;  %v498_v52 = vld [vmem:[#allocation3] sm:$0xff] }
 0x145   : > { %451 = vst [vmem:[#allocation3 + $0x30] sm:$0xf] %v447_v44  ;;  %452 = vst [vmem:[#allocation3 + $0x38] sm:$0xf] %v448_v45 }
 0x146   : > { %v488_v46 = vpop.permute.xlu1 %487 }
 0x147   : > { %v417_v48 = vpop.permute.xlu0 %416 }
 0x148   : > { %v422_v50 = vsel %vm373_vm0, %v417_v48, %v419_v27  ;;  %v501_v51 = vld [vmem:[#allocation3 + $0x18] sm:$0xff]  ;;  %v500_v53 = vld [vmem:[#allocation3 + $0x10] sm:$0xff] }
 0x149   : > { %426 = vst [vmem:[#allocation3 + $0x20] sm:$0xf0] %v422_v50  ;;  %v976_v56 = vpack.c.bf16 %v501_v51, %v499_v49  ;;  %v978_v57 = vpack.c.bf16 %v500_v53, %v498_v52 }
 0x14a   : > { %v486_v58 = vpop.permute.xlu1 %485 }
 0x14b   : > { %v491_v60 = vsel %vm290_vm1, %v486_v58, %v488_v46  ;;  %977 = vmatprep.subr.bf16.mxu0 %v976_v56  ;;  %v460_v62 = vpop.permute.xlu0 %459 }
 0x14c   : > { %495 = vst [vmem:[#allocation3 + $0x40] sm:$0xf] %v491_v60  ;;  %v466_v63 = vsel %vm465_vm6, %v460_v62, %v1390_v55  ;;  %979 = vmatpush1.bf16.msra.mxu0 %v978_v57  ;;  %v505_v1 = vld [vmem:[#allocation3 + $0x38] sm:$0xff]  ;;  %v497_v55 = vld [vmem:[%s1557_s2] sm:$0xf] }
 0x14d   : > { %470 = vst [vmem:[#allocation3 + $0x30] sm:$0xf0] %v466_v63  ;;  %v980_v2 = vpack.c.bf16 %v505_v1, %v503_v0 }
 0x14e   : > { %v698_v45 = vpop.permute.xlu1 %697 }
 0x14f   : > { %981 = vmatprep.subr.bf16.mxu0 %v980_v2  ;;  %v490_v3 = vpop.permute.xlu0 %489 }
 0x150   : > { %v492_v4 = vsel %vm290_vm1, %v488_v46, %v490_v3  ;;  %v502_v5 = vld [vmem:[#allocation3 + $0x20] sm:$0xff] }
 0x151   : > { %496 = vst [vmem:[#allocation3 + $0x48] sm:$0xf] %v492_v4 }
 0x152   : > { %v717_v46 = vpop.permute.xlu1 %716 }
 0x153   : > { %v506_v9 = vld [vmem:[#allocation3 + $0x40] sm:$0xf] }
 0x154   : > { %v504_v6 = vld [vmem:[#allocation3 + $0x30] sm:$0xff] }
 0x155   : > { %v982_v7 = vpack.c.bf16 %v504_v6, %v502_v5 }
 0x156   : > { %v735_v48 = vpop.permute.xlu1 %734 }
 0x157   : > { %983 = vmatpush1.bf16.msra.mxu0 %v982_v7 }
 0x158   : > { %v507_v8 = vld [vmem:[#allocation3 + $0x48] sm:$0xf] }
 0x159   : > { %963 = vmatprep.subr.msk.mxu0 %vm518_vm8, %v507_v8 }
 0x15b   : > { %964 = vmatpush1.msk.msra.mxu0 %vm518_vm8, %v506_v9 }
 0x15c   : > { %965 = vmatmul.mubr.msk.f32.vlgmr.msra.gmra.mrb[0].mxu0 %vm514_vm9, %v497_v55 }
 0x160   : > { %v512_v12 = vpop.permute.xlu0 %511 }
 0x22f   : > { %v591_v13 = vpop.f32.mrb[0].mxu0 }
 0x230   : > { %v592_v14 = vadd.f32 %v591_v13, %v512_v12  ;;  %v593_v15 = vpop.f32.mrb[1].mxu0 }
 0x231   : > { %v594_v16 = vadd.f32 %v593_v15, %v512_v12 }
 0x232   : > { %v596_v17 = vmax.f32 %v592_v14, 0.0 }
 0x233   : > { %v597_v18 = vmax.f32 %v594_v16, 0.0 }
 0x234   : > { %v1058_v43 = vcombine.low %v596_v17, %v596_v17 }
 0x235   : > { %v600_v19 = vcombine.low %v596_v17, %v597_v18  ;;  %v1057_v20 = vcombine.low %v597_v18, %v597_v18 }
 0x237   : > { %602 = vst [vmem:[#allocation2 + $0x4] sm:$0xff] %v600_v19  ;;  %683 = vst [vmem:[#allocation3 + $0x20] sm:$0xf] %v600_v19  ;;  %v707_v40 = vmul.f32 %v600_v19, %v1394_v59  ;;  %v743_v59 = vld [vmem:[#allocation2 + $0xc] sm:$0xf] }
 0x238   : > { %684 = vst [vmem:[#allocation3 + $0x28] sm:$0xf] %v1057_v20  ;;  %v745_v44 = vmul.f32 %v743_v59, %v1388_v54 }
 0x239   : > { %v711_v41 = vcombine.high %v707_v40, %v707_v40 }
 0x23e   : > { %v622_v24 = vld [vmem:[#allocation2] sm:$0xff]  ;;  %v604_v25 = vld [vmem:[#allocation2 + $0x8] sm:$0xf] }
 0x23f   : > { %630 = vrot.lane.b32.xlu0 %v622_v24, %s1165_s17  ;;  %v606_v26 = vmul.f32 %v604_v25, %v1343_v22  ;;  %v1056_v27 = vld [vmem:[#allocation2 + $0x8] ss:$0 sps:$4 sm:$0xff]   ;;  %v661_v31 = vmul.f32 %v622_v24, %v1347_v23  ;;  %v605_v33 = vmul.f32 %v622_v24, %v1353_v29  ;;  %v626_v34 = vcombine.low %v622_v24, %v622_v24 }
 0x240   : > { %v641_v28 = vld [vmem:[#allocation2 + $0x8] sm:$0xf]  ;;  %v642_v35 = vmul.f32 %v622_v24, %v1369_v39 }
 0x241   : > { %614 = vrot.lane.b32.xlu1 %v606_v26, %s1164_s15  ;;  %v643_v32 = vmul.f32 %v641_v28, %v1355_v30  ;;  %v660_v22 = vld [vmem:[#allocation2 + $0x8] sm:$0xf]  ;;  %v609_v36 = vcombine.high %v605_v33, %v605_v33  ;;  %v687_v30 = vmul.f32 %v600_v19, %v1378_v47  ;;  %v665_v39 = vcombine.low %v661_v31, %v661_v31 }
 0x242   : > { %v662_v23 = vmul.f32 %v660_v22, %v1341_v21  ;;  %v646_v37 = vcombine.high %v642_v35, %v642_v35  ;;  %v744_v21 = vmul.f32 %v600_v19, %v1402_v61  ;;  %v772_v61 = vld [vmem:[%s1560_s5] sm:$0xf] }
 0x243   : > { %732 = vrot.lane.b32.xlu0 %v600_v19, %s1166_s29  ;;  %v691_v47 = vcombine.low %v687_v30, %v687_v30 }
 0x244   : > { %v666_v29 = vcombine.low %v662_v23, %v662_v23  ;;  %v748_v42 = vcombine.high %v744_v21, %v744_v21 }
 0x245   : > { %632 = vrot.lane.b32.xlu1 %v1056_v27, %s1165_s17 }
 0x247   : > { %669 = vrot.lane.b32.xlu0 %v661_v31, %s1163_s14 }
 0x249   : > { %651 = vrot.lane.b32.xlu1 %v643_v32, %s1162_s11 }
 0x24b   : > { %610 = vrot.lane.b32.xlu0 %v605_v33, %s1164_s15 }
 0x24d   : > { %628 = vrot.lane.b32.xlu1 %v626_v34, %s1165_s17 }
 0x24f   : > { %647 = vrot.lane.b32.xlu0 %v642_v35, %s1162_s11 }
 0x251   : > { %612 = vrot.lane.b32.xlu1 %v609_v36, %s1164_s15 }
 0x253   : > { %695 = vrot.lane.b32.xlu0 %v687_v30, %s1159_s8 }
 0x255   : > { %671 = vrot.lane.b32.xlu1 %v666_v29, %s1163_s14 }
 0x257   : > { %649 = vrot.lane.b32.xlu0 %v646_v37, %s1162_s11 }
 0x259   : > { %667 = vrot.lane.b32.xlu1 %v665_v39, %s1163_s14  ;;  %v761_v39 = vld [vmem:[%s1559_s4] sm:$0xf]  ;;  %s267_s14 = scalar_lea.vmem [#allocation7], %s960_s28 }
 0x25a   : > { %s883_s15 = sshll.u32 %s267_s14, 4  ;;  %s1513_s15 = int_to_ptr.vmem [resolvable:$true] %s883_s15 }
 0x25b   : > { %714 = vrot.lane.b32.xlu0 %v711_v41, %s1161_s13  ;;  %s1089_s18 = scalar_lea.vmem %s1513_s15, 128 }
 0x25c   : > { %p1090_p6 = scmp.ne.s32.totalorder %s1513_s15, %s1089_s18 }
 0x25d   : > { %712 = vrot.lane.b32.xlu1 %v707_v40, %s1161_s13  ;;  %s975_s13 = sshll.u32 %s1225_s25, 7  ;;  %s1168_s25 = smov [#allocation7]  }
 0x25e   : > { %s1511_s19 = scalar_lea.hbm %s1561_s6, %s975_s13  ;;  %p1091_p12 = pnand %p1090_p6, %p1570_p11 }
 0x25f   : > { %693 = vrot.lane.b32.xlu0 %v691_v47, %s1159_s8  ;;  %s1093_s28 = sshll.u32 %s1168_s25, 4  ;;  %s1094_s28 = int_to_ptr.vmem [resolvable:$false] %s1093_s28 }
 0x260   : > { %p1092_p13 = pneg %p1091_p12  ;;  %s1095_s20 = scalar_lea.vmem %s1094_s28, 256 }
 0x261   : > { %751 = vrot.lane.b32.xlu1 %v748_v42, %s1160_s12  ;;  %p1096_p7 = scmp.lt.s32.totalorder %s1513_s15, %s1094_s28  ;;  %p1097_p10 = scmp.lt.s32.totalorder %s1095_s20, %s1089_s18 }
 0x263   : > { %730 = vrot.lane.b32.xlu0 %v1058_v43, %s1166_s29  ;;  %p1098_p2 = por %p1097_p10, %p1096_p7 }
 0x265   : > { %749 = vrot.lane.b32.xlu1 %v744_v21, %s1160_s12  ;;  %p1099_p4 = pnand %p1098_p2, %p1092_p13 }
 0x267   : > { %753 = vrot.lane.b32.xlu0 %v745_v44, %s1160_s12 }
 0x26b   : > { %775 = vperm.xlu0 %1048, %v772_v61  }
 0x2b1   : > { %v631_v49 = vpop.permute.xlu0 %630 }
 0x2b3   : > { %v615_v50 = vpop.permute.xlu1 %614 }
 0x2b5   : > { %v733_v51 = vpop.permute.xlu0 %732 }
 0x2b6   : > { %v737_v52 = vsel %vm465_vm6, %v733_v51, %v735_v48 }
 0x2b7   : > { %741 = vst [vmem:[#allocation3 + $0x38] sm:$0xf0] %v737_v52  ;;  %v633_v53 = vpop.permute.xlu1 %632 }
 0x2b8   : > { %v635_v56 = vsel %vm324_vm4, %v631_v49, %v633_v53 }
 0x2b9   : > { %639 = vst [vmem:[#allocation3 + $0x8] sm:$0xf0] %v635_v56  ;;  %v670_v54 = vpop.permute.xlu0 %669 }
 0x2bb   : > { %v652_v57 = vpop.permute.xlu1 %651 }
 0x2bd   : > { %v611_v58 = vpop.permute.xlu0 %610 }
 0x2bf   : > { %v629_v60 = vpop.permute.xlu1 %628 }
 0x2c0   : > { %v634_v62 = vsel %vm324_vm4, %v629_v60, %v631_v49 }
 0x2c1   : > { %638 = vst [vmem:[#allocation3] sm:$0xf0] %v634_v62  ;;  %v648_v63 = vpop.permute.xlu0 %647 }
 0x2c3   : > { %v613_v0 = vpop.permute.xlu1 %612 }
 0x2c4   : > { %v616_v1 = vsel %vm305_vm7, %v611_v58, %v613_v0  ;;  %v617_v2 = vsel %vm305_vm7, %v613_v0, %v615_v50 }
 0x2c5   : > { %620 = vst [vmem:[#allocation3] sm:$0xf] %v616_v1  ;;  %621 = vst [vmem:[#allocation3 + $0x8] sm:$0xf] %v617_v2  ;;  %v696_v3 = vpop.permute.xlu0 %695 }
 0x2c6   : > { %v700_v4 = vsel %vm373_vm0, %v696_v3, %v698_v45 }
 0x2c7   : > { %704 = vst [vmem:[#allocation3 + $0x28] sm:$0xf0] %v700_v4  ;;  %v672_v5 = vpop.permute.xlu1 %671 }
 0x2c8   : > { %v674_v6 = vsel %vm389_vm3, %v670_v54, %v672_v5 }
 0x2c9   : > { %678 = vst [vmem:[#allocation3 + $0x18] sm:$0xf0] %v674_v6  ;;  %v650_v7 = vpop.permute.xlu0 %649 }
 0x2ca   : > { %v653_v8 = vsel %vm361_vm5, %v648_v63, %v650_v7  ;;  %v654_v55 = vsel %vm361_vm5, %v650_v7, %v652_v57 }
 0x2cb   : > { %657 = vst [vmem:[#allocation3 + $0x10] sm:$0xf] %v653_v8  ;;  %658 = vst [vmem:[#allocation3 + $0x18] sm:$0xf] %v654_v55  ;;  %v668_v9 = vpop.permute.xlu1 %667 }
 0x2cc   : > { %v673_v10 = vsel %vm389_vm3, %v668_v9, %v670_v54  ;;  %v763_v18 = vld [vmem:[#allocation3 + $0x8] sm:$0xff]  ;;  %v762_v25 = vld [vmem:[#allocation3] sm:$0xff] }
 0x2cd   : > { %677 = vst [vmem:[#allocation3 + $0x10] sm:$0xf0] %v673_v10  ;;  %v715_v12 = vpop.permute.xlu0 %714 }
 0x2ce   : > { %v719_v13 = vsel %vm346_vm2, %v715_v12, %v717_v46  ;;  %v767_v32 = vld [vmem:[#allocation3 + $0x28] sm:$0xff] }
 0x2cf   : > { %723 = vst [vmem:[#allocation3 + $0x38] sm:$0xf] %v719_v13  ;;  %v713_v14 = vpop.permute.xlu1 %712 }
 0x2d0   : > { %v718_v15 = vsel %vm346_vm2, %v713_v14, %v715_v12 }
 0x2d1   : > { %722 = vst [vmem:[#allocation3 + $0x30] sm:$0xf] %v718_v15  ;;  %v694_v16 = vpop.permute.xlu0 %693 }
 0x2d2   : > { %v699_v17 = vsel %vm373_vm0, %v694_v16, %v696_v3  ;;  %v765_v19 = vld [vmem:[#allocation3 + $0x18] sm:$0xff] }
 0x2d3   : > { %703 = vst [vmem:[#allocation3 + $0x20] sm:$0xf0] %v699_v17  ;;  %v752_v20 = vpop.permute.xlu1 %751  ;;  %v984_v24 = vpack.c.bf16 %v765_v19, %v763_v18 }
 0x2d4   : > { %v764_v26 = vld [vmem:[#allocation3 + $0x10] sm:$0xff] }
 0x2d5   : > { %v731_v27 = vpop.permute.xlu0 %730  ;;  %985 = vmatprep.subr.bf16.mxu1 %v984_v24  ;;  %v986_v28 = vpack.c.bf16 %v764_v26, %v762_v25 }
 0x2d6   : > { %v736_v31 = vsel %vm465_vm6, %v731_v27, %v733_v51  ;;  %v769_v33 = vld [vmem:[#allocation3 + $0x38] sm:$0xff] }
 0x2d7   : > { %740 = vst [vmem:[#allocation3 + $0x30] sm:$0xf0] %v736_v31  ;;  %987 = vmatpush1.bf16.msra.mxu1 %v986_v28  ;;  %v750_v34 = vpop.permute.xlu1 %749  ;;  %v988_v22 = vpack.c.bf16 %v769_v33, %v767_v32 }
 0x2d8   : > { %v755_v35 = vsel %vm290_vm1, %v750_v34, %v752_v20 }
 0x2d9   : > { %759 = vst [vmem:[#allocation3 + $0x40] sm:$0xf] %v755_v35  ;;  %v754_v36 = vpop.permute.xlu0 %753  ;;  %989 = vmatprep.subr.bf16.mxu1 %v988_v22 }
 0x2da   : > { %v756_v23 = vsel %vm290_vm1, %v752_v20, %v754_v36  ;;  %v766_v30 = vld [vmem:[#allocation3 + $0x20] sm:$0xff] }
 0x2db   : > { %760 = vst [vmem:[#allocation3 + $0x48] sm:$0xf] %v756_v23 }
 0x2de   : > { %v768_v29 = vld [vmem:[#allocation3 + $0x30] sm:$0xff] }
 0x2df   : > { %v990_v37 = vpack.c.bf16 %v768_v29, %v766_v30 }
 0x2e0   : > { %v770_v41 = vld [vmem:[#allocation3 + $0x40] sm:$0xf] }
 0x2e1   : > { %991 = vmatpush1.bf16.msra.mxu1 %v990_v37 }
 0x2e2   : > { %v771_v40 = vld [vmem:[#allocation3 + $0x48] sm:$0xf] }
 0x2e3   : > { %966 = vmatprep.subr.msk.mxu1 %vm518_vm8, %v771_v40 }
 0x2e5   : > { %967 = vmatpush1.msk.msra.mxu1 %vm518_vm8, %v770_v41 }
 0x2e6   : > { %968 = vmatmul.mubr.msk.f32.vlgmr.msra.gmra.mrb[0].mxu1 %vm514_vm9, %v761_v39 }
 0x2ea   : > { %v776_v21 = vpop.permute.xlu0 %775 }
 0x3b9   : > { %v853_v47 = vpop.f32.mrb[0].mxu1 }
 0x3ba   : > { %v854_v42 = vadd.f32 %v853_v47, %v776_v21  ;;  %v855_v43 = vpop.f32.mrb[1].mxu1 }
 0x3bb   : > { %v856_v59 = vadd.f32 %v855_v43, %v776_v21 }
 0x3bc   : > { %v861_v44 = vadd.f32 %v854_v42, %v1325_v11 }
 0x3bd   : > { %v862_v61 = vadd.f32 %v856_v59, %v1365_v38 }
 0x3bf   : > { %v865_v45 = vcombine.low %v861_v44, %v862_v61 }
 0x3c1   : > { %867 = vst [vmem:[%s267_s14] sm:$0xff] %v865_v45 }
 0x3c2   : > { %1102 = shalt.err (!%p1099_p4)
}
 0x3c3   : > { %s1103_s26 = scalar_lea.hbm %s1511_s19, 128  ;;  %s1107_s8 = scalar_lea.hbm %s1561_s6, 256 }
 0x3c4   : > { %p1104_p5 = scmp.ne.s32.totalorder %s1511_s19, %s1103_s26  ;;  %p1108_p0 = scmp.lt.u32.totalorder %s1511_s19, %s1561_s6 }
 0x3c5   : > { %p1109_p1 = scmp.lt.u32.totalorder %s1107_s8, %s1103_s26  ;;  %p1111_p6 = scmp.lt.u32.totalorder %s1103_s26, %s1511_s19 }
 0x3c6   : > { %p1105_p8 = pnand %p1104_p5, %p1570_p11 }
 0x3c7   : > { %p1110_p3 = por %p1109_p1, %p1108_p0 }
 0x3c8   : > { %p1106_p9 = pneg %p1105_p8 }
 0x3c9   : > { %p1112_p12 = por %p1111_p6, %p1110_p3 }
 0x3cb   : > { %p1113_p13 = pnand %p1112_p12, %p1106_p9 }
 0x3cd   : > { %1116 = shalt.err (!%p1113_p13)
}
 0x3ce   : > { %994 = dma.vmem_to_hbm [thread:$0]  (%p1570_p11), %s1513_s15, 128, %s1511_s19, %s869_s16  }
 0x3cf PF: > { %s895_s14 = sand.u32 1, %s1143_s21   ;;  %p1571_p7 = scmp.ne.s32.totalorder %s1566_s10, 0 }
 0x3d0   : > { %p1572_p10 = scmp.ge.s32.totalorder %s1155_s24, 2  ;;  %s896_s17 = scalar_lea.sflag [#allocation6], %s895_s14 }
 0x3d2   : > { %p1001_p2 = pnand %p1572_p10, %p1571_p7 }
 0x3d4   : > { %1138 = dma.done.wait (!%p1001_p2), %s896_s17, 128  }
 0x3d5   : > { %1140 = vsyncadd (!%p1001_p2), %s896_s17, 4294967168  ;;  %p19_p4 = scmp.ge.s32.totalorder %s1229_s27, 4   ;;  %s1573_s21 = smov %s1147_s22 }
 0x3d6   : > { %s1574_s22 = smov %s1151_s23  ;;  %s1575_s23 = smov %s1241_s30 }
 0x3d7   : > { %s1576_s24 = smov %s1229_s27  ;;  %21 = sbr.rel (!%p19_p4) target bundleno = 5 (0x5), region = 90 }
 0x3de   :  { %901 = vsyncpa [#allocation5], 1 }
 0x3df   :  { %903 = vsyncpa [#allocation5 + $0x1], 1 }
 0x3e0   :  { %904 = vsyncpa [#allocation6], 1 }
 0x3e1   :  { %906 = vsyncpa [#allocation6 + $0x1], 1 }

</bundles_post_ra>
